<compile_context>
chip_gen: v6e
topology: v6e:2x2x1
jax: 0.10.0
libtpu: 0.0.40
codegen_flags: <defaults>
</compile_context>

<pallas_src>
import jax
import jax.numpy as jnp
from jax.experimental import pallas as pl
from jax.experimental.pallas import tpu as pltpu

LANE = 128       # lane tile (last dim)
BF16_ROWS = 16   # bf16 sublane packing (rows per sublane tile)


def _round_up(x, m):
    return (x + m - 1) // m * m


def _pad2(a, rows, cols, dtype=None):
    dtype = a.dtype if dtype is None else dtype
    out = jnp.zeros((rows, cols), dtype)
    return out.at[: a.shape[0], : a.shape[1]].set(a.astype(dtype))


def _pad1(a, n, dtype=None):
    dtype = a.dtype if dtype is None else dtype
    out = jnp.zeros((n,), dtype)
    return out.at[: a.shape[0]].set(a.astype(dtype))


def _vmem_limit_bytes():
    """Generation-aware VMEM budget: ~3/4 of physical, capped at 96 MiB."""
    try:
        cap = pltpu.get_tpu_info().vmem_capacity_bytes
    except Exception:
        cap = 64 * 1024 * 1024          # conservative fallback (safe on every generation)
    return int(min(cap * 3 // 4, 96 * 1024 * 1024))


# ----------------------------------------------------------------------------- kernel
def _decoder_step_kernel(x_ref,        # VMEM [B_pad, H_pad]       bf16  (embedded input)
                         h_ref,        # VMEM [B_pad, H_pad]       f32   (prev hidden)
                         wg_ref,       # VMEM [2*H_pad, 4*H_pad]   bf16  (fused gate weights)
                         bg_ref,       # VMEM [1, 4*H_pad]         f32
                         wout_ref,     # VMEM [H_pad, TN]          bf16  (vocab tile j, streamed)
                         bout_ref,     # VMEM [1, TN]              f32   (vocab tile j)
                         logits_ref,   # VMEM [B_pad, TN]          f32   (vocab tile j)
                         hnew_ref,     # VMEM [B_pad, H_pad]       f32   (resident: index (0,0) ∀ j)
                         hnew_bf16):   # VMEM [B_pad, H_pad]       bf16  scratch (cast once)
    h_pad = h_ref.shape[1]

    # ---- GRU cell: runs once, on the first vocab tile. h_new persists in the resident ----
    # ---- output block and in a bf16 scratch reused by every projection tile.          ----
    @pl.when(pl.program_id(0) == 0)
    def _gru_cell():
        h = h_ref[...]
        # one fused MXU matmul for all gates: columns = [r | z | n_x | n_h]
        # (the two structural zero blocks cost ~25% extra MACs; fine while B is small /
        #  the gate matmul is latency-bound — see review note.)
        xh = jnp.concatenate([x_ref[...], h.astype(jnp.bfloat16)], axis=1)
        g = jnp.dot(xh, wg_ref[...], preferred_element_type=jnp.float32) + bg_ref[...]
        r = jax.nn.sigmoid(g[:, 0:h_pad])
        z = jax.nn.sigmoid(g[:, h_pad:2 * h_pad])
        n = jnp.tanh(g[:, 2 * h_pad:3 * h_pad] + r * g[:, 3 * h_pad:4 * h_pad])
        h_new = (1.0 - z) * n + z * h
        hnew_ref[...] = h_new                          # resident output block (flushed at end)
        hnew_bf16[...] = h_new.astype(jnp.bfloat16)    # cast once; reused by every vocab tile

    # ---- every vocab tile: stream W_out tile and project -------------------------------
    logits_ref[...] = (
        jnp.dot(hnew_bf16[...], wout_ref[...], preferred_element_type=jnp.float32)
        + bout_ref[...]
    )


# ----------------------------------------------------------------------------- packing
def init_params(key, hidden_size, vocab_size):
    """Logical (PyTorch-equivalent) parameters, stored transposed for x @ W."""
    ks = jax.random.split(key, 7)
    s = 1.0 / jnp.sqrt(hidden_size)
    return {
        "embedding": jax.random.normal(ks[0], (vocab_size, hidden_size), jnp.float32),
        "w_ih_t": jax.random.uniform(ks[1], (hidden_size, 3 * hidden_size), jnp.float32, -s, s),
        "w_hh_t": jax.random.uniform(ks[2], (hidden_size, 3 * hidden_size), jnp.float32, -s, s),
        "b_ih": jax.random.uniform(ks[3], (3 * hidden_size,), jnp.float32, -s, s),
        "b_hh": jax.random.uniform(ks[4], (3 * hidden_size,), jnp.float32, -s, s),
        "w_out_t": jax.random.uniform(ks[5], (hidden_size, vocab_size), jnp.float32, -s, s),
        "b_out": jax.random.uniform(ks[6], (vocab_size,), jnp.float32, -s, s),
    }


def pack_decoder_params(p, *, tile_n=1024):
    """Pad to lane tiles and pack the fused gate weight once, at init time.

    tile_n: vocab tile (lanes) streamed per grid step; keep >= 1024 in production — one bf16
    W_out tile is only h_pad*tile_n*2 bytes, so large tiles are cheap and amortize the ~0.35 us
    per-grid-step overhead (HBM-roofline ~85% at 1024 vs ~30% at 128).
    """
    assert tile_n % LANE == 0
    emb, w_ih, w_hh = p["embedding"], p["w_ih_t"], p["w_hh_t"]
    b_ih, b_hh, w_out, b_out = p["b_ih"], p["b_hh"], p["w_out_t"], p["b_out"]
    V, H = emb.shape
    h_pad = _round_up(H, LANE)
    v_pad = _round_up(V, tile_n)

    def gate_block(wx_g, wh_g):        # [H,H] x 2 -> [2*h_pad, h_pad]
        return jnp.concatenate([_pad2(wx_g, h_pad, h_pad),
                                _pad2(wh_g, h_pad, h_pad)], axis=0)

    zeros_hh = jnp.zeros((h_pad, h_pad), jnp.float32)
    r_blk = gate_block(w_ih[:, 0:H], w_hh[:, 0:H])
    z_blk = gate_block(w_ih[:, H:2 * H], w_hh[:, H:2 * H])
    nx_blk = jnp.concatenate([_pad2(w_ih[:, 2 * H:3 * H], h_pad, h_pad), zeros_hh], axis=0)
    nh_blk = jnp.concatenate([zeros_hh, _pad2(w_hh[:, 2 * H:3 * H], h_pad, h_pad)], axis=0)
    w_gates = jnp.concatenate([r_blk, z_blk, nx_blk, nh_blk], axis=1).astype(jnp.bfloat16)

    b_gates = jnp.concatenate([
        _pad1(b_ih[0:H] + b_hh[0:H], h_pad),           # r : biases folded
        _pad1(b_ih[H:2 * H] + b_hh[H:2 * H], h_pad),   # z : biases folded
        _pad1(b_ih[2 * H:3 * H], h_pad),               # n (input half)
        _pad1(b_hh[2 * H:3 * H], h_pad),               # n (hidden half; scaled by r in-kernel)
    ])[None, :].astype(jnp.float32)

    return {
        # bf16 table: rows are consumed in bf16 by the gate matmul anyway; halves gather bytes.
        "emb": _pad2(emb, V, h_pad, dtype=jnp.bfloat16),
        "w_gates": w_gates,
        "b_gates": b_gates,
        "w_out": _pad2(w_out, h_pad, v_pad, dtype=jnp.bfloat16),
        "b_out": _pad1(b_out, v_pad)[None, :].astype(jnp.float32),
        "H": H, "V": V, "h_pad": h_pad, "v_pad": v_pad, "tile_n": tile_n,
    }


# ----------------------------------------------------------------------------- forward
def decoder_rnn_forward(word_input, prev_hidden, packed):
    """Mirrors DecoderRNN.forward (eval mode).

    word_input : int32 [B]
    prev_hidden: f32   [1, B, H]
    returns (output [B, V], hidden [1, B, H])
    """
    H, V = packed["H"], packed["V"]
    h_pad, v_pad, tile_n = packed["h_pad"], packed["v_pad"], packed["tile_n"]
    B = word_input.shape[0]
    # bf16 packs 16 rows per sublane tile -> pad the batch to 16 so the MXU operands are
    # tile-aligned (no hidden relayout).
    b_pad = _round_up(max(B, BF16_ROWS), BF16_ROWS)
    num_v_tiles = v_pad // tile_n

    # Embedding lookup hoisted to the wrapper (small decode batch) per the perf review; the
    # table is bf16 so the gathered rows feed the bf16 gate matmul directly.
    # TODO(synk): dropout(p=0.1) on the embedded input is eval-mode identity here.
    x = jnp.take(packed["emb"], word_input.astype(jnp.int32), axis=0)           # [B, h_pad] bf16
    x_pad = jnp.zeros((b_pad, h_pad), jnp.bfloat16).at[:B].set(x)
    h_prev = jnp.zeros((b_pad, h_pad), jnp.float32).at[:B, :H].set(
        prev_hidden[0].astype(jnp.float32))

    flops = 2 * b_pad * (2 * h_pad) * (4 * h_pad) + 2 * b_pad * h_pad * v_pad
    bytes_accessed = (packed["w_gates"].size * 2 + packed["w_out"].size * 2
                      + packed["b_gates"].size * 4 + packed["b_out"].size * 4
                      + b_pad * h_pad * 2          # x (bf16) in
                      + 2 * b_pad * h_pad * 4      # h_prev in, h_new out
                      + b_pad * v_pad * 4)         # logits out
    cost = pl.CostEstimate(flops=flops,
                           transcendentals=3 * b_pad * h_pad,
                           bytes_accessed=bytes_accessed)

    # Grid-invariant inputs are single-buffered (constant index maps -> double buffering would
    # only waste VMEM; frees room for larger streamed W_out tiles, esp. on v7x's 64 MiB).
    single = pl.Buffered(1)

    grid_spec = pltpu.PrefetchScalarGridSpec(
        num_scalar_prefetch=0,
        grid=(num_v_tiles,),
        in_specs=[
            pl.BlockSpec((b_pad, h_pad), lambda j: (0, 0), pipeline_mode=single),         # x
            pl.BlockSpec((b_pad, h_pad), lambda j: (0, 0), pipeline_mode=single),         # h_prev
            pl.BlockSpec((2 * h_pad, 4 * h_pad), lambda j: (0, 0), pipeline_mode=single), # gate W
            pl.BlockSpec((1, 4 * h_pad), lambda j: (0, 0), pipeline_mode=single),         # gate b
            pl.BlockSpec((h_pad, tile_n), lambda j: (0, j)),     # W_out tile (streamed, 2-buf)
            pl.BlockSpec((1, tile_n), lambda j: (0, j)),         # b_out tile
        ],
        out_specs=[
            pl.BlockSpec((b_pad, tile_n), lambda j: (0, j)),     # logits tile
            pl.BlockSpec((b_pad, h_pad), lambda j: (0, 0)),      # new hidden (resident block)
        ],
        scratch_shapes=[
            pltpu.VMEM((b_pad, h_pad), jnp.bfloat16),            # h_new cast once, reused ∀ tiles
        ],
    )

    logits_pad, hnew_pad = pl.pallas_call(
        _decoder_step_kernel,
        out_shape=(
            jax.ShapeDtypeStruct((b_pad, v_pad), jnp.float32),
            jax.ShapeDtypeStruct((b_pad, h_pad), jnp.float32),
        ),
        grid_spec=grid_spec,
        compiler_params=pltpu.CompilerParams(
            # h_new state (resident output block + bf16 scratch) is produced at j==0 and
            # consumed by every later vocab tile -> the vocab axis must run sequentially.
            dimension_semantics=("arbitrary",),
            vmem_limit_bytes=_vmem_limit_bytes(),
        ),
        cost_estimate=cost,
    )(x_pad, h_prev, packed["w_gates"], packed["b_gates"], packed["w_out"], packed["b_out"])

    output = logits_pad[:B, :V]
    hidden = hnew_pad[:B, :H][None, :, :]
    return output, hidden


# ----------------------------------------------------------------------------- reference
def _reference_forward(word_input, prev_hidden, p, *, bf16_weights=False):
    """Pure-JAX reference; bf16_weights=True mirrors the kernel's bf16 matmul inputs."""
    H = p["w_ih_t"].shape[0]
    q = (lambda a: a.astype(jnp.bfloat16).astype(jnp.float32)) if bf16_weights else (lambda a: a)
    x = jnp.take(p["embedding"], word_input, axis=0)
    h = prev_hidden[0]
    gx = q(x) @ q(p["w_ih_t"]) + p["b_ih"]
    gh = q(h) @ q(p["w_hh_t"]) + p["b_hh"]
    r = jax.nn.sigmoid(gx[:, :H] + gh[:, :H])
    z = jax.nn.sigmoid(gx[:, H:2 * H] + gh[:, H:2 * H])
    n = jnp.tanh(gx[:, 2 * H:] + r * gh[:, 2 * H:])
    h_new = (1.0 - z) * n + z * h
    out = q(h_new) @ q(p["w_out_t"]) + p["b_out"]
    return out, h_new[None]


if __name__ == "__main__":
    # ---- small-shape check (single vocab tile) -----------------------------------------
    B, H, V = 4, 32, 300   # batch, hidden_size, target_vocab_size

    key = jax.random.PRNGKey(0)
    k_params, k_tok, k_hid = jax.random.split(key, 3)

    logical = init_params(k_params, H, V)
    packed = pack_decoder_params(logical)   # default tile_n=1024 (perf review: keep >= 1024)

    word_input = jax.random.randint(k_tok, (B,), 0, V, dtype=jnp.int32)
    prev_hidden = jax.random.normal(k_hid, (1, B, H), jnp.float32)

    out, hidden = decoder_rnn_forward(word_input, prev_hidden, packed)
    out = jax.block_until_ready(out)
    hidden = jax.block_until_ready(hidden)
    assert out.shape == (B, V) and hidden.shape == (1, B, H)

    # tight check against a reference that applies the same bf16 weight rounding
    ref_out_q, ref_hid_q = _reference_forward(word_input, prev_hidden, logical, bf16_weights=True)
    assert jnp.allclose(out, ref_out_q, atol=1e-3, rtol=1e-3)
    assert jnp.allclose(hidden, ref_hid_q, atol=1e-3, rtol=1e-3)

    # loose check against the full-f32 module semantics (only bf16 quantization error)
    ref_out, ref_hid = _reference_forward(word_input, prev_hidden, logical)
    assert jnp.allclose(out, ref_out, atol=1e-1, rtol=1e-1)
    assert jnp.allclose(hidden, ref_hid, atol=5e-2, rtol=5e-2)

    # ---- multi-vocab-tile check (exercises persistent h_new across grid steps) ---------
    V2 = 2500
    logical2 = init_params(jax.random.PRNGKey(1), H, V2)
    packed2 = pack_decoder_params(logical2, tile_n=1024)   # v_pad=3072 -> 3-step vocab grid
    ids2 = jax.random.randint(jax.random.PRNGKey(2), (B,), 0, V2, dtype=jnp.int32)
    hid2 = jax.random.normal(jax.random.PRNGKey(3), (1, B, H), jnp.float32)

    out2, hidden2 = decoder_rnn_forward(ids2, hid2, packed2)
    out2 = jax.block_until_ready(out2)
    hidden2 = jax.block_until_ready(hidden2)
    ref2_out, ref2_hid = _reference_forward(ids2, hid2, logical2, bf16_weights=True)
    assert jnp.allclose(out2, ref2_out, atol=1e-3, rtol=1e-3)
    assert jnp.allclose(hidden2, ref2_hid, atol=1e-3, rtol=1e-3)

    print("KERNEL_OK")
</pallas_src>

<mosaic_0001>
module attributes {stable_mosaic.version = 11 : i64} {
  func.func @_decoder_step_kernel(%arg0: i32, %arg1: memref<16x128xbf16, #tpu.memory_space<vmem>>, %arg2: memref<16x128xf32, #tpu.memory_space<vmem>>, %arg3: memref<256x512xbf16, #tpu.memory_space<vmem>>, %arg4: memref<1x512xf32, #tpu.memory_space<vmem>>, %arg5: memref<128x1024xbf16, #tpu.memory_space<vmem>>, %arg6: memref<1x1024xf32, #tpu.memory_space<vmem>>, %arg7: memref<16x1024xf32, #tpu.memory_space<vmem>>, %arg8: memref<16x128xf32, #tpu.memory_space<vmem>>, %arg9: memref<16x128xbf16, #tpu.memory_space<vmem>>) attributes {dimension_semantics = [#tpu.dimension_semantics<arbitrary>], iteration_bounds = array<i64: 1>, scalar_prefetch = 0 : i64, scratch_operands = 1 : i64, tpu.core_type = #tpu.core_type<tc>, window_params = [{pipeline_mode = #tpu.pipeline_mode<synchronous>, transform_indices = @transform_0, window_bounds = array<i64: 16, 128>}, {pipeline_mode = #tpu.pipeline_mode<synchronous>, transform_indices = @transform_1, window_bounds = array<i64: 16, 128>}, {pipeline_mode = #tpu.pipeline_mode<synchronous>, transform_indices = @transform_2, window_bounds = array<i64: 256, 512>}, {pipeline_mode = #tpu.pipeline_mode<synchronous>, transform_indices = @transform_3, window_bounds = array<i64: 1, 512>}, {transform_indices = @transform_4, window_bounds = array<i64: 128, 1024>}, {transform_indices = @transform_5, window_bounds = array<i64: 1, 1024>}, {transform_indices = @transform_6, window_bounds = array<i64: 16, 1024>}, {pipeline_mode = #tpu.pipeline_mode<synchronous>, transform_indices = @transform_7, window_bounds = array<i64: 16, 128>}]} {
    %c0_i32 = arith.constant 0 : i32
    %0 = arith.cmpi eq, %arg0, %c0_i32 : i32
    %1 = arith.extui %0 : i1 to i32
    %c0_i32_0 = arith.constant 0 : i32
    %2 = arith.cmpi ne, %1, %c0_i32_0 : i32
    scf.if %2 {
      %c0_8 = arith.constant 0 : index
      %c0_9 = arith.constant 0 : index
      %10 = vector.load %arg2[%c0_8, %c0_9] : memref<16x128xf32, #tpu.memory_space<vmem>>, vector<16x128xf32>
      %c0_10 = arith.constant 0 : index
      %c0_11 = arith.constant 0 : index
      %11 = vector.load %arg1[%c0_10, %c0_11] : memref<16x128xbf16, #tpu.memory_space<vmem>>, vector<16x128xbf16>
      %12 = arith.truncf %10 : vector<16x128xf32> to vector<16x128xbf16>
      %13 = tpu.concatenate %11, %12 in 1 : vector<16x128xbf16>, vector<16x128xbf16> -> vector<16x256xbf16>
      %c0_12 = arith.constant 0 : index
      %c0_13 = arith.constant 0 : index
      %14 = vector.load %arg3[%c0_12, %c0_13] : memref<256x512xbf16, #tpu.memory_space<vmem>>, vector<256x512xbf16>
      %cst_14 = arith.constant dense<0.000000e+00> : vector<16x512xf32>
      %15 = tpu.matmul %13, %14, %cst_14 {dimension_numbers = #tpu.dot_dimension_numbers<[1], [0], [0], [1], [0, 0, 1, 1], [], []>} : vector<16x256xbf16>, vector<256x512xbf16>, vector<16x512xf32> -> vector<16x512xf32>
      %c0_15 = arith.constant 0 : index
      %c0_16 = arith.constant 0 : index
      %16 = vector.load %arg4[%c0_15, %c0_16] : memref<1x512xf32, #tpu.memory_space<vmem>>, vector<1x512xf32>
      %17 = vector.broadcast %16 : vector<1x512xf32> to vector<16x512xf32>
      %18 = arith.addf %15, %17 : vector<16x512xf32>
      %19 = vector.extract_strided_slice %18 {offsets = [0, 0], sizes = [16, 128], strides = [1, 1]} : vector<16x512xf32> to vector<16x128xf32>
      %20 = arith.negf %19 : vector<16x128xf32>
      %21 = math.exp %20 : vector<16x128xf32>
      %cst_17 = arith.constant 1.000000e+00 : f32
      %22 = vector.broadcast %cst_17 : f32 to vector<16x128xf32>
      %23 = arith.addf %22, %21 : vector<16x128xf32>
      %24 = arith.divf %22, %23 : vector<16x128xf32>
      %25 = vector.extract_strided_slice %18 {offsets = [0, 128], sizes = [16, 128], strides = [1, 1]} : vector<16x512xf32> to vector<16x128xf32>
      %26 = arith.negf %25 : vector<16x128xf32>
      %27 = math.exp %26 : vector<16x128xf32>
      %cst_18 = arith.constant 1.000000e+00 : f32
      %28 = vector.broadcast %cst_18 : f32 to vector<16x128xf32>
      %29 = arith.addf %28, %27 : vector<16x128xf32>
      %30 = arith.divf %28, %29 : vector<16x128xf32>
      %31 = vector.extract_strided_slice %18 {offsets = [0, 256], sizes = [16, 128], strides = [1, 1]} : vector<16x512xf32> to vector<16x128xf32>
      %32 = vector.extract_strided_slice %18 {offsets = [0, 384], sizes = [16, 128], strides = [1, 1]} : vector<16x512xf32> to vector<16x128xf32>
      %33 = arith.mulf %24, %32 : vector<16x128xf32>
      %34 = arith.addf %31, %33 : vector<16x128xf32>
      %35 = math.tanh %34 : vector<16x128xf32>
      %cst_19 = arith.constant 1.000000e+00 : f32
      %36 = vector.broadcast %cst_19 : f32 to vector<16x128xf32>
      %37 = arith.subf %36, %30 : vector<16x128xf32>
      %38 = arith.mulf %37, %35 : vector<16x128xf32>
      %39 = arith.mulf %30, %10 : vector<16x128xf32>
      %40 = arith.addf %38, %39 : vector<16x128xf32>
      %c0_20 = arith.constant 0 : index
      %c0_21 = arith.constant 0 : index
      %41 = vector.load %arg8[%c0_20, %c0_21] : memref<16x128xf32, #tpu.memory_space<vmem>>, vector<16x128xf32>
      tpu.vector_store %arg8[%c0_20, %c0_21], %40 {strides = array<i32>} : memref<16x128xf32, #tpu.memory_space<vmem>>, vector<16x128xf32>,
      %42 = arith.truncf %40 : vector<16x128xf32> to vector<16x128xbf16>
      %c0_22 = arith.constant 0 : index
      %c0_23 = arith.constant 0 : index
      %43 = vector.load %arg9[%c0_22, %c0_23] : memref<16x128xbf16, #tpu.memory_space<vmem>>, vector<16x128xbf16>
      tpu.vector_store %arg9[%c0_22, %c0_23], %42 {strides = array<i32>} : memref<16x128xbf16, #tpu.memory_space<vmem>>, vector<16x128xbf16>,
    } else {
    }
    %c0 = arith.constant 0 : index
    %c0_1 = arith.constant 0 : index
    %3 = vector.load %arg9[%c0, %c0_1] : memref<16x128xbf16, #tpu.memory_space<vmem>>, vector<16x128xbf16>
    %c0_2 = arith.constant 0 : index
    %c0_3 = arith.constant 0 : index
    %4 = vector.load %arg5[%c0_2, %c0_3] : memref<128x1024xbf16, #tpu.memory_space<vmem>>, vector<128x1024xbf16>
    %cst = arith.constant dense<0.000000e+00> : vector<16x1024xf32>
    %5 = tpu.matmul %3, %4, %cst {dimension_numbers = #tpu.dot_dimension_numbers<[1], [0], [0], [1], [0, 0, 1, 1], [], []>} : vector<16x128xbf16>, vector<128x1024xbf16>, vector<16x1024xf32> -> vector<16x1024xf32>
    %c0_4 = arith.constant 0 : index
    %c0_5 = arith.constant 0 : index
    %6 = vector.load %arg6[%c0_4, %c0_5] : memref<1x1024xf32, #tpu.memory_space<vmem>>, vector<1x1024xf32>
    %7 = vector.broadcast %6 : vector<1x1024xf32> to vector<16x1024xf32>
    %8 = arith.addf %5, %7 : vector<16x1024xf32>
    %c0_6 = arith.constant 0 : index
    %c0_7 = arith.constant 0 : index
    %9 = vector.load %arg7[%c0_6, %c0_7] : memref<16x1024xf32, #tpu.memory_space<vmem>>, vector<16x1024xf32>
    tpu.vector_store %arg7[%c0_6, %c0_7], %8 {strides = array<i32>} : memref<16x1024xf32, #tpu.memory_space<vmem>>, vector<16x1024xf32>,
    return
  }
  func.func @transform_0(%arg0: i32) -> (i32, i32) {
    %c0_i32 = arith.constant 0 : i32
    %c0_i32_0 = arith.constant 0 : i32
    %c0_i32_1 = arith.constant 0 : i32
    return %c0_i32, %c0_i32_0 : i32, i32
  }
  func.func @transform_1(%arg0: i32) -> (i32, i32) {
    %c0_i32 = arith.constant 0 : i32
    %c0_i32_0 = arith.constant 0 : i32
    %c0_i32_1 = arith.constant 0 : i32
    return %c0_i32, %c0_i32_0 : i32, i32
  }
  func.func @transform_2(%arg0: i32) -> (i32, i32) {
    %c0_i32 = arith.constant 0 : i32
    %c0_i32_0 = arith.constant 0 : i32
    %c0_i32_1 = arith.constant 0 : i32
    return %c0_i32, %c0_i32_0 : i32, i32
  }
  func.func @transform_3(%arg0: i32) -> (i32, i32) {
    %c0_i32 = arith.constant 0 : i32
    %c0_i32_0 = arith.constant 0 : i32
    %c0_i32_1 = arith.constant 0 : i32
    return %c0_i32, %c0_i32_0 : i32, i32
  }
  func.func @transform_4(%arg0: i32) -> (i32, i32) {
    %c0_i32 = arith.constant 0 : i32
    %c0_i32_0 = arith.constant 0 : i32
    return %c0_i32, %arg0 : i32, i32
  }
  func.func @transform_5(%arg0: i32) -> (i32, i32) {
    %c0_i32 = arith.constant 0 : i32
    %c0_i32_0 = arith.constant 0 : i32
    return %c0_i32, %arg0 : i32, i32
  }
  func.func @transform_6(%arg0: i32) -> (i32, i32) {
    %c0_i32 = arith.constant 0 : i32
    %c0_i32_0 = arith.constant 0 : i32
    return %c0_i32, %arg0 : i32, i32
  }
  func.func @transform_7(%arg0: i32) -> (i32, i32) {
    %c0_i32 = arith.constant 0 : i32
    %c0_i32_0 = arith.constant 0 : i32
    %c0_i32_1 = arith.constant 0 : i32
    return %c0_i32, %c0_i32_0 : i32, i32
  }
}

</mosaic_0001>

<bundles_post_ra>
// kernel: tpu_custom_call.1
= control target key start
LH: loop header
LB: loop body
LE: loop exit
PB: predicated region body
PF: predicated region fallthrough
CT: control target
= control target key end

     0   :  { %13 = vsyncpa [#allocation4], 0  ;;  %s1892_s0 = inlined_call_operand.hbm [shape: bf16[16,128], index: 0, kind: input, shape index: {}]   ;;  %s1893_s1 = inlined_call_operand.hbm [shape: f32[16,128], index: 1, kind: input, shape index: {}]   ;;  %s1894_s2 = inlined_call_operand.hbm [shape: bf16[256,512], index: 2, kind: input, shape index: {}]   ;;  %s1895_s3 = inlined_call_operand.hbm [shape: f32[1,512], index: 3, kind: input, shape index: {}]   ;;  %s1896_s4 = inlined_call_operand.hbm [shape: bf16[128,1024], index: 4, kind: input, shape index: {}]   ;;  %s1897_s5 = inlined_call_operand.vmem [shape: f32[1,1024], index: 5, kind: input, shape index: {}]   ;;  %s1898_s6 = inlined_call_operand.hbm [shape: f32[16,1024], index: 6, kind: output, shape index: {0}]   ;;  %s1899_s7 = inlined_call_operand.hbm [shape: f32[16,128], index: 7, kind: output, shape index: {1}]  }
   0x1   :  { %14 = vsyncpa [#allocation7], 0 }
   0x2   :  { %15 = vsyncpa [#allocation10], 0 }
   0x3   :  { %16 = vsyncpa [#allocation5], 0 }
   0x4   :  { %17 = vsyncpa [#allocation14], 0  ;;  %s1736_s24 = smov [#allocation6]  }
   0x5   :  { %s35_s25 = sshll.u32 %s1736_s24, 4  ;;  %s36_s25 = int_to_ptr.vmem [resolvable:$true] %s35_s25 }
   0x6   :  { %s1594_s26 = scalar_lea.vmem %s36_s25, 256  ;;  %p1599_p1 = scmp.lt.s32.totalorder %s36_s25, %s36_s25 }
   0x7   :  { %p1595_p0 = scmp.ne.s32.totalorder %s36_s25, %s1594_s26  ;;  %p1600_p2 = scmp.lt.s32.totalorder %s1594_s26, %s1594_s26 }
   0x9   :  { %p1601_p3 = por %p1600_p2, %p1599_p1 }
   0xb   :  { %p1602_p4 = pnand %p1601_p3, %p1595_p0 }
   0xd   :  { %1605 = shalt.err (!%p1602_p4)
}
   0xe   :  { %s1737_s27 = smov 128   ;;  %s1738_s28 = smov 8  }
   0xf   :  { %41 = dma.hbm_to_vmem [thread:$0]  %s1893_s1, 256, %s36_s25, [#allocation7], %s1737_s27, %s1737_s27, %s1738_s28  }
  0x10   :  { %s1739_s8 = smov [#allocation9]   ;;  %s1740_s10 = smov [#allocation3]  }
  0x11   :  { %s60_s9 = sshll.u32 %s1739_s8, 4  ;;  %s23_s11 = sshll.u32 %s1740_s10, 4  ;;  %s61_s9 = int_to_ptr.vmem [resolvable:$true] %s60_s9  ;;  %s24_s11 = int_to_ptr.vmem [resolvable:$true] %s23_s11 }
  0x12   :  { %s1614_s12 = scalar_lea.vmem %s61_s9, 64  ;;  %p1619_p6 = scmp.lt.s32.totalorder %s61_s9, %s61_s9 }
  0x13   :  { %p1615_p5 = scmp.ne.s32.totalorder %s61_s9, %s1614_s12  ;;  %p1620_p7 = scmp.lt.s32.totalorder %s1614_s12, %s1614_s12 }
  0x15   :  { %p1621_p8 = por %p1620_p7, %p1619_p6 }
  0x17   :  { %p1622_p9 = pnand %p1621_p8, %p1615_p5 }
  0x19   :  { %1625 = shalt.err (!%p1622_p9)
}
  0x1a   :  { %63 = dma.hbm_to_vmem [thread:$0]  %s1895_s3, 64, %s61_s9, [#allocation10]  }
  0x1b   :  { %s1634_s15 = scalar_lea.vmem %s24_s11, 128  ;;  %p1639_p11 = scmp.lt.s32.totalorder %s24_s11, %s24_s11 }
  0x1c   :  { %p1635_p10 = scmp.ne.s32.totalorder %s24_s11, %s1634_s15  ;;  %p1640_p12 = scmp.lt.s32.totalorder %s1634_s15, %s1634_s15 }
  0x1e   :  { %p1641_p13 = por %p1640_p12, %p1639_p11 }
  0x20   :  { %p1642_p0 = pnand %p1641_p13, %p1635_p10 }
  0x22   :  { %1645 = shalt.err (!%p1642_p0)
}
  0x23   :  { %s1741_s1 = smov 64   ;;  %s1742_s16 = smov 4  }
  0x24   :  { %29 = dma.hbm_to_vmem [thread:$0]  %s1892_s0, 128, %s24_s11, [#allocation4], %s1741_s1, %s1741_s1, %s1742_s16  }
  0x25   :  { %s1743_s19 = smov [#allocation8]  }
  0x26   :  { %s47_s20 = sshll.u32 %s1743_s19, 4  ;;  %s48_s20 = int_to_ptr.vmem [resolvable:$true] %s47_s20 }
  0x27   :  { %s1654_s3 = scalar_lea.vmem %s48_s20, 8192  ;;  %p1659_p2 = scmp.lt.s32.totalorder %s48_s20, %s48_s20 }
  0x28   :  { %p1655_p1 = scmp.ne.s32.totalorder %s48_s20, %s1654_s3  ;;  %p1660_p3 = scmp.lt.s32.totalorder %s1654_s3, %s1654_s3 }
  0x2a   :  { %p1661_p4 = por %p1660_p3, %p1659_p2 }
  0x2c   :  { %p1662_p5 = pnand %p1661_p4, %p1655_p1 }
  0x2e   :  { %1665 = shalt.err (!%p1662_p5)
}
  0x2f   :  { %s1744_s21 = smov 256   ;;  %s1745_s22 = smov 16  }
  0x30   :  { %53 = dma.hbm_to_vmem [thread:$0]  %s1894_s2, 8192, %s48_s20, [#allocation7], %s1744_s21, %s1744_s21, %s1745_s22  }
  0x31   :  { %s1746_s25 = smov [#allocation11]  }
  0x32   :  { %s69_s26 = sshll.u32 %s1746_s25, 4  ;;  %s70_s26 = int_to_ptr.vmem [resolvable:$true] %s69_s26 }
  0x33   :  { %s1674_s0 = scalar_lea.vmem %s70_s26, 8192  ;;  %p1679_p7 = scmp.lt.s32.totalorder %s70_s26, %s70_s26 }
  0x34   :  { %p1675_p6 = scmp.ne.s32.totalorder %s70_s26, %s1674_s0  ;;  %p1680_p8 = scmp.lt.s32.totalorder %s1674_s0, %s1674_s0 }
  0x36   :  { %p1681_p9 = por %p1680_p8, %p1679_p7 }
  0x38   :  { %p1682_p10 = pnand %p1681_p9, %p1675_p6 }
  0x3a   :  { %1685 = shalt.err (!%p1682_p10)
}
  0x3b   :  { %s1747_s29 = smov 512   ;;  %s1748_s30 = smov 32  }
  0x3c   :  { %75 = dma.hbm_to_vmem [thread:$0]  %s1896_s4, 8192, %s70_s26, [#allocation10], %s1747_s29, %s1747_s29, %s1748_s30  }
  0x3d   :  { %1726 = dma.done.wait [#allocation4], 128  }
  0x3e   :  { %1727 = vsyncadd [#allocation4], 4294967168 }
  0x3f   :  { %1728 = dma.done.wait [#allocation7], 8448  }
  0x40   :  { %1729 = vsyncadd [#allocation7], 4294958848 }
  0x41   :  { %1730 = dma.done.wait [#allocation10], 8256  }
  0x42   :  { %1731 = vsyncadd [#allocation10], 4294959040  ;;  %v1468_v0 = vld [vmem:[#allocation8 + $0xe4] ss:$16 sps:$4 sm:$0xff]   ;;  %v1470_v1 = vld [vmem:[#allocation8 + $0xe0] ss:$16 sps:$4 sm:$0xff]  }
  0x43   :  { %515 = vmatprep.subr.bf16.mxu0 %v1468_v0  ;;  %v1471_v2 = vld [vmem:[#allocation8 + $0xc4] ss:$16 sps:$4 sm:$0xff]   ;;  %v1473_v3 = vld [vmem:[#allocation8 + $0xc0] ss:$16 sps:$4 sm:$0xff]   ;;  %v1488_v7 = vld [vmem:[#allocation8 + $0xec] ss:$16 sps:$4 sm:$0xff]  }
  0x44   :  { %516 = vmatpush1.bf16.msra.mxu0 %v1470_v1  ;;  %v1474_v4 = vld [vmem:[#allocation8 + $0xa4] ss:$16 sps:$4 sm:$0xff]   ;;  %v1476_v5 = vld [vmem:[#allocation8 + $0xa0] ss:$16 sps:$4 sm:$0xff]   ;;  %v1491_v8 = vld [vmem:[#allocation8 + $0xe8] ss:$16 sps:$4 sm:$0xff]   ;;  %558 = vmatprep.subr.bf16.mxu1 %v1488_v7 }
  0x45   :  { %517 = vmatprep.subr.bf16.mxu0 %v1471_v2  ;;  %v1477_v6 = vld [vmem:[#allocation8 + $0x84] ss:$16 sps:$4 sm:$0xff]   ;;  %v1479_v9 = vld [vmem:[#allocation8 + $0x80] ss:$16 sps:$4 sm:$0xff]   ;;  %559 = vmatpush1.bf16.msra.mxu1 %v1491_v8  ;;  %v1494_v11 = vld [vmem:[#allocation8 + $0xcc] ss:$16 sps:$4 sm:$0xff]  }
  0x46   :  { %v1480_v10 = vld [vmem:[#allocation8 + $0x64] ss:$16 sps:$4 sm:$0xff]   ;;  %v1497_v12 = vld [vmem:[#allocation8 + $0xc8] ss:$16 sps:$4 sm:$0xff]   ;;  %560 = vmatprep.subr.bf16.mxu1 %v1494_v11  ;;  %v1482_v13 = vld [vmem:[#allocation8 + $0x60] ss:$16 sps:$4 sm:$0xff]  }
  0x47   :  { %v1483_v14 = vld [vmem:[#allocation8 + $0x44] ss:$16 sps:$4 sm:$0xff]   ;;  %v1500_v15 = vld [vmem:[#allocation8 + $0xac] ss:$16 sps:$4 sm:$0xff]   ;;  %v1503_v16 = vld [vmem:[#allocation8 + $0xa8] ss:$16 sps:$4 sm:$0xff]  }
  0x48   :  { %518 = vmatpush1.bf16.msra.mxu0 %v1473_v3  ;;  %v1506_v17 = vld [vmem:[#allocation8 + $0x8c] ss:$16 sps:$4 sm:$0xff]   ;;  %v1485_v18 = vld [vmem:[#allocation8 + $0x40] ss:$16 sps:$4 sm:$0xff]   ;;  %v1486_v19 = vld [vmem:[#allocation8 + $0x24] ss:$16 sps:$4 sm:$0xff]  }
  0x49   :  { %519 = vmatprep.subr.bf16.mxu0 %v1474_v4  ;;  %561 = vmatpush1.bf16.msra.mxu1 %v1497_v12  ;;  %v1509_v20 = vld [vmem:[#allocation8 + $0x88] ss:$16 sps:$4 sm:$0xff]   ;;  %v1512_v21 = vld [vmem:[#allocation8 + $0x6c] ss:$16 sps:$4 sm:$0xff]   ;;  %v1490_v22 = vld [vmem:[#allocation8 + $0x20] ss:$16 sps:$4 sm:$0xff]  }
  0x4a   :  { %562 = vmatprep.subr.bf16.mxu1 %v1500_v15  ;;  %v1492_v23 = vld [vmem:[#allocation8 + $0x4] ss:$16 sps:$4 sm:$0xff]   ;;  %v1515_v24 = vld [vmem:[#allocation8 + $0x68] ss:$16 sps:$4 sm:$0xff]   ;;  %v1518_v25 = vld [vmem:[#allocation8 + $0x4c] ss:$16 sps:$4 sm:$0xff]  }
  0x4b   :  { %v1496_v26 = vld [vmem:[#allocation8] ss:$16 sps:$4 sm:$0xff]   ;;  %v1498_v27 = vld [vmem:[#allocation8 + $0x1e4] ss:$16 sps:$4 sm:$0xff]   ;;  %v1521_v28 = vld [vmem:[#allocation8 + $0x48] ss:$16 sps:$4 sm:$0xff]  }
  0x4c   :  { %520 = vmatpush1.bf16.msra.mxu0 %v1476_v5  ;;  %v1524_v29 = vld [vmem:[#allocation8 + $0x2c] ss:$16 sps:$4 sm:$0xff]   ;;  %v1502_v30 = vld [vmem:[#allocation8 + $0x1e0] ss:$16 sps:$4 sm:$0xff]   ;;  %v1504_v31 = vld [vmem:[#allocation8 + $0x1c4] ss:$16 sps:$4 sm:$0xff]  }
  0x4d   :  { %521 = vmatprep.subr.bf16.mxu0 %v1477_v6  ;;  %563 = vmatpush1.bf16.msra.mxu1 %v1503_v16  ;;  %v1527_v32 = vld [vmem:[#allocation8 + $0x28] ss:$16 sps:$4 sm:$0xff]   ;;  %v1530_v33 = vld [vmem:[#allocation8 + $0xc] ss:$16 sps:$4 sm:$0xff]   ;;  %v1508_v34 = vld [vmem:[#allocation8 + $0x1c0] ss:$16 sps:$4 sm:$0xff]  }
  0x4e   :  { %564 = vmatprep.subr.bf16.mxu1 %v1506_v17  ;;  %v1510_v35 = vld [vmem:[#allocation8 + $0x1a4] ss:$16 sps:$4 sm:$0xff]   ;;  %v1815_v37 = vld [vmem:[#allocation6 + $0x8] sm:$0xff]  ;;  %v1514_v41 = vld [vmem:[#allocation8 + $0x1a0] ss:$16 sps:$4 sm:$0xff]   ;;  %s1750_s2 = smov [#allocation13]  }
  0x4f   :  { %v1813_v36 = vld [vmem:[#allocation6] sm:$0xff]  ;;  %v1533_v38 = vld [vmem:[#allocation8 + $0x8] ss:$16 sps:$4 sm:$0xff]   ;;  %v1536_v40 = vld [vmem:[#allocation8 + $0x1ec] ss:$16 sps:$4 sm:$0xff]   ;;  %s1290_s4 = sshll.u32 %s1750_s2, 4  ;;  %s1291_s4 = int_to_ptr.vmem [resolvable:$true] %s1290_s4 }
  0x50   :  { %522 = vmatpush1.bf16.msra.mxu0 %v1479_v9  ;;  %v102_v39 = vpack.c.bf16 %v1815_v37, %v1813_v36  ;;  %v1516_v42 = vld [vmem:[#allocation8 + $0x184] ss:$16 sps:$4 sm:$0xff]   ;;  %v1539_v43 = vld [vmem:[#allocation8 + $0x1e8] ss:$16 sps:$4 sm:$0xff]   ;;  %v1542_v44 = vld [vmem:[#allocation8 + $0x1cc] ss:$16 sps:$4 sm:$0xff]   ;;  %p1691_p12 = scmp.lt.s32.totalorder %s1291_s4, %s1291_s4 }
  0x51   :  { %523 = vmatprep.subr.bf16.mxu0 %v1480_v10  ;;  %565 = vmatpush1.bf16.msra.mxu1 %v1509_v20  ;;  %v1520_v45 = vld [vmem:[#allocation8 + $0x180] ss:$16 sps:$4 sm:$0xff]   ;;  %v1522_v46 = vld [vmem:[#allocation8 + $0x164] ss:$16 sps:$4 sm:$0xff]   ;;  %v1545_v47 = vld [vmem:[#allocation8 + $0x1c8] ss:$16 sps:$4 sm:$0xff]  }
  0x52   :  { %566 = vmatprep.subr.bf16.mxu1 %v1512_v21  ;;  %547 = vmatprep.mubr.bf16.mxu0 %v102_v39  ;;  %v1547_v48 = vld [vmem:[#allocation8 + $0x1ac] ss:$16 sps:$4 sm:$0xff]   ;;  %v1526_v49 = vld [vmem:[#allocation8 + $0x160] ss:$16 sps:$4 sm:$0xff]   ;;  %v1528_v50 = vld [vmem:[#allocation8 + $0x144] ss:$16 sps:$4 sm:$0xff]  }
  0x53   :  { %590 = vmatprep.mubr.bf16.mxu1 %v102_v39  ;;  %v1549_v51 = vld [vmem:[#allocation8 + $0x1a8] ss:$16 sps:$4 sm:$0xff]   ;;  %v1550_v52 = vld [vmem:[#allocation8 + $0x18c] ss:$16 sps:$4 sm:$0xff]   ;;  %v1532_v53 = vld [vmem:[#allocation8 + $0x140] ss:$16 sps:$4 sm:$0xff]  }
  0x54   :  { %524 = vmatpush1.bf16.msra.mxu0 %v1482_v13  ;;  %v1534_v54 = vld [vmem:[#allocation8 + $0x124] ss:$16 sps:$4 sm:$0xff]   ;;  %v1552_v55 = vld [vmem:[#allocation8 + $0x188] ss:$16 sps:$4 sm:$0xff]   ;;  %v1553_v56 = vld [vmem:[#allocation8 + $0x16c] ss:$16 sps:$4 sm:$0xff]  }
  0x55   :  { %525 = vmatprep.subr.bf16.mxu0 %v1483_v14  ;;  %567 = vmatpush1.bf16.msra.mxu1 %v1515_v24  ;;  %v1538_v57 = vld [vmem:[#allocation8 + $0x120] ss:$16 sps:$4 sm:$0xff]   ;;  %v1540_v58 = vld [vmem:[#allocation8 + $0x104] ss:$16 sps:$4 sm:$0xff]   ;;  %v1555_v59 = vld [vmem:[#allocation8 + $0x168] ss:$16 sps:$4 sm:$0xff]  }
  0x56   :  { %568 = vmatprep.subr.bf16.mxu1 %v1518_v25  ;;  %v1556_v60 = vld [vmem:[#allocation8 + $0x14c] ss:$16 sps:$4 sm:$0xff]   ;;  %v1544_v61 = vld [vmem:[#allocation8 + $0x100] ss:$16 sps:$4 sm:$0xff]   ;;  %v1558_v62 = vld [vmem:[#allocation8 + $0x148] ss:$16 sps:$4 sm:$0xff]  }
  0x57   :  { %v1559_v63 = vld [vmem:[#allocation8 + $0x12c] ss:$16 sps:$4 sm:$0xff]   ;;  %v1561_v1 = vld [vmem:[#allocation8 + $0x128] ss:$16 sps:$4 sm:$0xff]   ;;  %s1686_s10 = scalar_lea.vmem %s1291_s4, 256 }
  0x58   :  { %526 = vmatpush1.bf16.msra.mxu0 %v1485_v18  ;;  %v1546_v0 = vld [vmem:[#allocation3] sm:$0xff]   ;;  %p1687_p11 = scmp.ne.s32.totalorder %s1291_s4, %s1686_s10  ;;  %p1692_p13 = scmp.lt.s32.totalorder %s1686_s10, %s1686_s10 }
  0x59   :  { %527 = vmatprep.subr.bf16.mxu0 %v1486_v19  ;;  %569 = vmatpush1.bf16.msra.mxu1 %v1521_v28  ;;  %v1562_v2 = vld [vmem:[#allocation8 + $0x10c] ss:$16 sps:$4 sm:$0xff]   ;;  %v1564_v3 = vld [vmem:[#allocation8 + $0x108] ss:$16 sps:$4 sm:$0xff]  }
  0x5a   :  { %570 = vmatprep.subr.bf16.mxu1 %v1524_v29  ;;  %v709_v4 = vld [vmem:[#allocation11 + $0x1c0] sm:$0xff]  ;;  %v710_v6 = vld [vmem:[#allocation11 + $0x1c8] sm:$0xff]  ;;  %p1693_p0 = por %p1692_p13, %p1691_p12 }
  0x5b   :  { %v713_v5 = vld [vmem:[#allocation11 + $0x1e0] sm:$0xff]  ;;  %v714_v8 = vld [vmem:[#allocation11 + $0x1e8] sm:$0xff] }
  0x5c   :  { %528 = vmatpush1.bf16.msra.mxu0 %v1490_v22  ;;  %v1437_v7 = vcombine.high %v709_v4, %v713_v5  ;;  %v1436_v9 = vcombine.low %v709_v4, %v713_v5  ;;  %v1438_v10 = vcombine.low %v710_v6, %v714_v8  ;;  %v1439_v11 = vcombine.high %v710_v6, %v714_v8  ;;  %v701_v12 = vld [vmem:[#allocation11 + $0x180] sm:$0xff]  ;;  %v702_v14 = vld [vmem:[#allocation11 + $0x188] sm:$0xff]  ;;  %v1819_v4 = vld [vmem:[#allocation11 + $0x1d0] sm:$0xff]  ;;  %p1694_p1 = pnand %p1693_p0, %p1687_p11 }
  0x5d   :  { %529 = vmatprep.subr.bf16.mxu0 %v1492_v23  ;;  %571 = vmatpush1.bf16.msra.mxu1 %v1527_v32  ;;  %v705_v13 = vld [vmem:[#allocation11 + $0x1a0] sm:$0xff]  ;;  %v706_v16 = vld [vmem:[#allocation11 + $0x1a8] sm:$0xff]  ;;  %v1821_v5 = vld [vmem:[#allocation11 + $0x1f0] sm:$0xff]  ;;  %v1749_v8 = vmov 0  }
  0x5e   :  { %572 = vmatprep.subr.bf16.mxu1 %v1530_v33  ;;  %v1429_v15 = vcombine.high %v701_v12, %v705_v13  ;;  %v1428_v17 = vcombine.low %v701_v12, %v705_v13  ;;  %v1430_v18 = vcombine.low %v702_v14, %v706_v16  ;;  %v1431_v19 = vcombine.high %v702_v14, %v706_v16  ;;  %v693_v20 = vld [vmem:[#allocation11 + $0x140] sm:$0xff]  ;;  %v694_v22 = vld [vmem:[#allocation11 + $0x148] sm:$0xff] }
  0x5f   :  { %v697_v21 = vld [vmem:[#allocation11 + $0x160] sm:$0xff]  ;;  %v698_v24 = vld [vmem:[#allocation11 + $0x168] sm:$0xff]  ;;  %v1441_v12 = vcombine.high %v1819_v4, %v1821_v5 }
  0x60   :  { %530 = vmatpush1.bf16.msra.mxu0 %v1496_v26  ;;  %v1421_v23 = vcombine.high %v693_v20, %v697_v21  ;;  %v1420_v25 = vcombine.low %v693_v20, %v697_v21  ;;  %v1422_v26 = vcombine.low %v694_v22, %v698_v24  ;;  %v685_v28 = vld [vmem:[#allocation11 + $0x100] sm:$0xff]  ;;  %v690_v32 = vld [vmem:[#allocation11 + $0x128] sm:$0xff] }
  0x61   :  { %531 = vmatprep.subr.bf16.mxu0 %v1498_v27  ;;  %573 = vmatpush1.bf16.msra.mxu1 %v1533_v38  ;;  %v1423_v27 = vcombine.high %v694_v22, %v698_v24  ;;  %v689_v29 = vld [vmem:[#allocation11 + $0x120] sm:$0xff] }
  0x62   :  { %574 = vmatprep.subr.bf16.mxu1 %v1536_v40  ;;  %v1412_v33 = vcombine.low %v685_v28, %v689_v29  ;;  %v677_v38 = vld [vmem:[#allocation11 + $0xc0] sm:$0xff]  ;;  %v678_v40 = vld [vmem:[#allocation11 + $0xc8] sm:$0xff] }
  0x63   :  { %v681_v39 = vld [vmem:[#allocation11 + $0xe0] sm:$0xff] }
  0x64   :  { %532 = vmatpush2.bf16.msra.mxu0 %v1502_v30  ;;  %v686_v30 = vld [vmem:[#allocation11 + $0x108] sm:$0xff] }
  0x65   :  { %533 = vmatprep.subr.bf16.mxu0 %v1504_v31  ;;  %575 = vmatpush2.bf16.msra.mxu1 %v1539_v43  ;;  %v1413_v31 = vcombine.high %v685_v28, %v689_v29  ;;  %v1404_v43 = vcombine.low %v677_v38, %v681_v39 }
  0x66   :  { %576 = vmatprep.subr.bf16.mxu1 %v1542_v44 }
  0x68   :  { %534 = vmatpush2.bf16.msra.mxu0 %v1508_v34  ;;  %v1414_v34 = vcombine.low %v686_v30, %v690_v32 }
  0x69   :  { %535 = vmatprep.subr.bf16.mxu0 %v1510_v35  ;;  %577 = vmatpush2.bf16.msra.mxu1 %v1545_v47  ;;  %v1415_v35 = vcombine.high %v686_v30, %v690_v32  ;;  %v673_v47 = vld [vmem:[#allocation11 + $0xa0] sm:$0xff] }
  0x6a   :  { %578 = vmatprep.subr.bf16.mxu1 %v1547_v48  ;;  %v670_v48 = vld [vmem:[#allocation11 + $0x88] sm:$0xff] }
  0x6c   :  { %536 = vmatpush2.bf16.msra.mxu0 %v1514_v41  ;;  %v1405_v41 = vcombine.high %v677_v38, %v681_v39 }
  0x6d   :  { %537 = vmatprep.subr.bf16.mxu0 %v1516_v42  ;;  %579 = vmatpush2.bf16.msra.mxu1 %v1549_v51  ;;  %v682_v42 = vld [vmem:[#allocation11 + $0xe8] sm:$0xff] }
  0x6e   :  { %580 = vmatprep.subr.bf16.mxu1 %v1550_v52  ;;  %v1406_v44 = vcombine.low %v678_v40, %v682_v42 }
  0x70   :  { %538 = vmatpush2.bf16.msra.mxu0 %v1520_v45  ;;  %v1407_v45 = vcombine.high %v678_v40, %v682_v42 }
  0x71   :  { %539 = vmatprep.subr.bf16.mxu0 %v1522_v46  ;;  %581 = vmatpush2.bf16.msra.mxu1 %v1552_v55  ;;  %v669_v46 = vld [vmem:[#allocation11 + $0x80] sm:$0xff] }
  0x72   :  { %582 = vmatprep.subr.bf16.mxu1 %v1553_v56  ;;  %v1396_v51 = vcombine.low %v669_v46, %v673_v47  ;;  %v665_v55 = vld [vmem:[#allocation11 + $0x60] sm:$0xff]  ;;  %v662_v56 = vld [vmem:[#allocation11 + $0x48] sm:$0xff] }
  0x74   :  { %540 = vmatpush2.bf16.msra.mxu0 %v1526_v49  ;;  %v1397_v49 = vcombine.high %v669_v46, %v673_v47 }
  0x75   :  { %541 = vmatprep.subr.bf16.mxu0 %v1528_v50  ;;  %583 = vmatpush2.bf16.msra.mxu1 %v1555_v59  ;;  %v674_v50 = vld [vmem:[#allocation11 + $0xa8] sm:$0xff] }
  0x76   :  { %584 = vmatprep.subr.bf16.mxu1 %v1556_v60  ;;  %v1398_v52 = vcombine.low %v670_v48, %v674_v50 }
  0x78   :  { %542 = vmatpush2.bf16.msra.mxu0 %v1532_v53  ;;  %v1399_v53 = vcombine.high %v670_v48, %v674_v50 }
  0x79   :  { %543 = vmatprep.subr.bf16.mxu0 %v1534_v54  ;;  %585 = vmatpush2.bf16.msra.mxu1 %v1558_v62  ;;  %v661_v54 = vld [vmem:[#allocation11 + $0x40] sm:$0xff] }
  0x7a   :  { %586 = vmatprep.subr.bf16.mxu1 %v1559_v63  ;;  %v1388_v59 = vcombine.low %v661_v54, %v665_v55  ;;  %v653_v62 = vld [vmem:[#allocation11] sm:$0xff] }
  0x7b   :  { %v657_v63 = vld [vmem:[#allocation11 + $0x20] sm:$0xff] }
  0x7c   :  { %544 = vmatpush2.bf16.msra.mxu0 %v1538_v57  ;;  %v1389_v57 = vcombine.high %v661_v54, %v665_v55 }
  0x7d   :  { %545 = vmatprep.subr.bf16.mxu0 %v1540_v58  ;;  %587 = vmatpush2.bf16.msra.mxu1 %v1561_v1  ;;  %v666_v58 = vld [vmem:[#allocation11 + $0x68] sm:$0xff]  ;;  %v1380_v1 = vcombine.low %v653_v62, %v657_v63 }
  0x7e   :  { %588 = vmatprep.subr.bf16.mxu1 %v1562_v2  ;;  %v1390_v60 = vcombine.low %v662_v56, %v666_v58  ;;  %v1381_v2 = vcombine.high %v653_v62, %v657_v63 }
  0x80   :  { %546 = vmatpush2.bf16.msra.mxu0 %v1544_v61  ;;  %v1391_v61 = vcombine.high %v662_v56, %v666_v58 }
  0x81   :  { %589 = vmatpush2.bf16.msra.mxu1 %v1564_v3  ;;  %1085 = vmatprep.subr.bf16.mxu0 %v1437_v7  ;;  %v658_v3 = vld [vmem:[#allocation11 + $0x28] sm:$0xff] }
  0x82   :  { %1128 = vmatprep.subr.bf16.mxu1 %v1439_v11  ;;  %v1828_v11 = vld [vmem:[#allocation11 + $0x1f8] sm:$0xff] }
  0x83   :  { %548 = vmatmul.mubr.bf16.vlgmr.msra.gmra.mxu0 %v1546_v0 }
  0x84   :  { %591 = vmatmul.mubr.bf16.vlgmr.msra.gmra.mxu1 %v1546_v0  ;;  %1086 = vmatpush1.bf16.msra.mxu0 %v1436_v9  ;;  %v654_v0 = vld [vmem:[#allocation11 + $0x8] sm:$0xff]  ;;  %v1440_v9 = vcombine.low %v1819_v4, %v1821_v5 }
  0x85   :  { %1129 = vmatpush1.bf16.msra.mxu1 %v1438_v10  ;;  %1087 = vmatprep.subr.bf16.mxu0 %v1429_v15  ;;  %v1382_v6 = vcombine.low %v654_v0, %v658_v3  ;;  %v1383_v7 = vcombine.high %v654_v0, %v658_v3  ;;  %v1826_v10 = vld [vmem:[#allocation11 + $0x1d8] sm:$0xff]  ;;  %v175_v15 = vlaneseq }
  0x86   :  { %1130 = vmatprep.subr.bf16.mxu1 %v1431_v19  ;;  %1117 = vmatprep.mubr.bf16.mxu0 %v1749_v8  ;;  %v1442_v13 = vcombine.low %v1826_v10, %v1828_v11  ;;  %v1443_v14 = vcombine.high %v1826_v10, %v1828_v11  ;;  %v679_v11 = vld [vmem:[#allocation11 + $0xd0] sm:$0xff] }
  0x87   :  { %1160 = vmatprep.mubr.bf16.mxu1 %v1749_v8  ;;  %v1837_v16 = vshrl.u32 %v175_v15, 7 }
  0x88   :  { %1088 = vmatpush1.bf16.msra.mxu0 %v1428_v17 }
  0x89   :  { %1131 = vmatpush1.bf16.msra.mxu1 %v1430_v18  ;;  %1089 = vmatprep.subr.bf16.mxu0 %v1421_v23  ;;  %v177_v17 = vsub.s32 0, %v1837_v16  ;;  %v173_v18 = vld [vmem:[#allocation9] sm:$0xf]  ;;  %v181_v20 = vsub.s32 1, %v1837_v16 }
  0x8a   :  { %1132 = vmatprep.subr.bf16.mxu1 %v1423_v27 }
  0x8b   :  { %v178_v19 = vrot.slane %v173_v18, %v177_v17 }
  0x8c   :  { %1090 = vmatpush1.bf16.msra.mxu0 %v1420_v25  ;;  %v182_v25 = vrot.slane %v173_v18, %v181_v20 }
  0x8d   :  { %1133 = vmatpush1.bf16.msra.mxu1 %v1422_v26  ;;  %1091 = vmatprep.subr.bf16.mxu0 %v1413_v31 }
  0x8e   :  { %1134 = vmatprep.subr.bf16.mxu1 %v1415_v35 }
  0x90   :  { %1092 = vmatpush1.bf16.msra.mxu0 %v1412_v33 }
  0x91   :  { %1135 = vmatpush1.bf16.msra.mxu1 %v1414_v34  ;;  %1093 = vmatprep.subr.bf16.mxu0 %v1405_v41  ;;  %v189_v41 = vsub.s32 3, %v1837_v16 }
  0x92   :  { %1136 = vmatprep.subr.bf16.mxu1 %v1407_v45 }
  0x93   :  { %v190_v45 = vrot.slane %v173_v18, %v189_v41 }
  0x94   :  { %1094 = vmatpush1.bf16.msra.mxu0 %v1404_v43  ;;  %v185_v43 = vsub.s32 2, %v1837_v16 }
  0x95   :  { %1137 = vmatpush1.bf16.msra.mxu1 %v1406_v44  ;;  %1095 = vmatprep.subr.bf16.mxu0 %v1397_v49 }
  0x96   :  { %1138 = vmatprep.subr.bf16.mxu1 %v1399_v53  ;;  %v186_v49 = vrot.slane %v173_v18, %v185_v43 }
  0x98   :  { %1096 = vmatpush1.bf16.msra.mxu0 %v1396_v51 }
  0x99   :  { %1139 = vmatpush1.bf16.msra.mxu1 %v1398_v52  ;;  %1097 = vmatprep.subr.bf16.mxu0 %v1389_v57 }
  0x9a   :  { %1140 = vmatprep.subr.bf16.mxu1 %v1391_v61 }
  0x9c   :  { %1098 = vmatpush1.bf16.msra.mxu0 %v1388_v59 }
  0x9d   :  { %1141 = vmatpush1.bf16.msra.mxu1 %v1390_v60  ;;  %1099 = vmatprep.subr.bf16.mxu0 %v1381_v2 }
  0x9e   :  { %1142 = vmatprep.subr.bf16.mxu1 %v1383_v7 }
  0xa0   :  { %1100 = vmatpush1.bf16.msra.mxu0 %v1380_v1 }
  0xa1   :  { %1143 = vmatpush1.bf16.msra.mxu1 %v1382_v6  ;;  %1171 = vmatprep.subr.bf16.mxu0 %v1441_v12 }
  0xa2   :  { %1214 = vmatprep.subr.bf16.mxu1 %v1443_v14 }
 0x143   :  { %v549_v21 = vpop.f32.mrf.mxu0 }
 0x144   :  { %v550_v22 = vadd.f32 %v549_v21, %v178_v19  ;;  %v592_v39 = vpop.f32.mrf.mxu1  ;;  %v703_v21 = vld [vmem:[#allocation11 + $0x190] sm:$0xff] }
 0x145   :  { %v551_v23 = vpop.f32.mrf.mxu0  ;;  %v593_v54 = vadd.f32 %v592_v39, %v186_v49  ;;  %v692_v39 = vld [vmem:[#allocation11 + $0x138] sm:$0xff] }
 0x146   :  { %v1373_v24 = vmul.f32 -1.442695, %v550_v22  ;;  %v552_v28 = vadd.f32 %v551_v23, %v182_v25  ;;  %v594_v42 = vpop.f32.mrf.mxu1  ;;  %v707_v22 = vld [vmem:[#allocation11 + $0x1b0] sm:$0xff]  ;;  %v704_v23 = vld [vmem:[#allocation11 + $0x198] sm:$0xff] }
 0x147   :  { %v553_v26 = vpop.f32.mrf.mxu0  ;;  %v595_v50 = vadd.f32 %v594_v42, %v190_v45  ;;  %v684_v42 = vld [vmem:[#allocation11 + $0xf8] sm:$0xff] }
 0x148   :  { %1566 = vpow2.f32 %v1373_v24  ;;  %v554_v27 = vadd.f32 %v553_v26, %v178_v19  ;;  %v1375_v32 = vmul.f32 -1.442695, %v552_v28  ;;  %v596_v46 = vpop.f32.mrf.mxu1  ;;  %v708_v24 = vld [vmem:[#allocation11 + $0x1b8] sm:$0xff]  ;;  %v699_v28 = vld [vmem:[#allocation11 + $0x170] sm:$0xff] }
 0x149   :  { %v555_v30 = vpop.f32.mrf.mxu0  ;;  %v597_v59 = vadd.f32 %v596_v46, %v186_v49  ;;  %v672_v49 = vld [vmem:[#allocation11 + $0x98] sm:$0xff] }
 0x14a   :  { %v1374_v29 = vmul.f32 -1.442695, %v554_v27  ;;  %v556_v31 = vadd.f32 %v555_v30, %v182_v25  ;;  %v598_v53 = vpop.f32.mrf.mxu1  ;;  %v695_v25 = vld [vmem:[#allocation11 + $0x150] sm:$0xff]  ;;  %v1435_v27 = vcombine.high %v704_v23, %v708_v24  ;;  %v700_v30 = vld [vmem:[#allocation11 + $0x178] sm:$0xff] }
 0x14b   :  { %v599_v57 = vadd.f32 %v598_v53, %v190_v45  ;;  %v1424_v4 = vcombine.low %v695_v25, %v699_v28 }
 0x14c   :  { %1568 = vpow2.f32 %v1374_v29  ;;  %v1376_v33 = vmul.f32 -1.442695, %v556_v31  ;;  %v696_v29 = vld [vmem:[#allocation11 + $0x158] sm:$0xff]  ;;  %v1434_v31 = vcombine.low %v704_v23, %v708_v24 }
 0x14d   :  { %1570 = vpow2.f32 %v1375_v32  ;;  %v1425_v32 = vcombine.high %v695_v25, %v699_v28  ;;  %v1426_v5 = vcombine.low %v696_v29, %v700_v30 }
 0x14e   :  { %1572 = vpow2.f32 %v1376_v33  ;;  %v1427_v33 = vcombine.high %v696_v29, %v700_v30 }
 0x155   :  { %v1567_v34 = vpop.eup %1566 }
 0x156   :  { %v607_v35 = vadd.f32 1.0, %v1567_v34  ;;  %v687_v34 = vld [vmem:[#allocation11 + $0x110] sm:$0xff] }
 0x158   :  { %1574 = vrcp.f32 %v607_v35  ;;  %v691_v35 = vld [vmem:[#allocation11 + $0x130] sm:$0xff] }
 0x159   :  { %v1569_v38 = vpop.eup %1568 }
 0x15a   :  { %v608_v40 = vadd.f32 1.0, %v1569_v38  ;;  %v1571_v44 = vpop.eup %1570  ;;  %v688_v38 = vld [vmem:[#allocation11 + $0x118] sm:$0xff] }
 0x15b   :  { %v1573_v47 = vpop.eup %1572  ;;  %v619_v48 = vadd.f32 1.0, %v1571_v44  ;;  %v1419_v10 = vcombine.high %v688_v38, %v692_v39  ;;  %v1416_v44 = vcombine.low %v687_v34, %v691_v35  ;;  %v1418_v45 = vcombine.low %v688_v38, %v692_v39 }
 0x15c   :  { %1576 = vrcp.f32 %v608_v40  ;;  %v620_v52 = vadd.f32 1.0, %v1573_v47  ;;  %v680_v40 = vld [vmem:[#allocation11 + $0xd8] sm:$0xff]  ;;  %v671_v47 = vld [vmem:[#allocation11 + $0x90] sm:$0xff] }
 0x15d   :  { %1578 = vrcp.f32 %v619_v48  ;;  %v675_v48 = vld [vmem:[#allocation11 + $0xb0] sm:$0xff] }
 0x15e   :  { %1580 = vrcp.f32 %v620_v52  ;;  %v1410_v52 = vcombine.low %v680_v40, %v684_v42  ;;  %v1401_v53 = vcombine.high %v671_v47, %v675_v48 }
 0x165   :  { %v1575_v51 = vpop.eup %1574 }
 0x166   :  { %v625_v55 = vmul.f32 %v1575_v51, %v595_v50  ;;  %v676_v50 = vld [vmem:[#allocation11 + $0xb8] sm:$0xff] }
 0x168   :  { %v627_v56 = vadd.f32 %v625_v55, %v593_v54  ;;  %v1403_v54 = vcombine.high %v672_v49, %v676_v50  ;;  %v663_v55 = vld [vmem:[#allocation11 + $0x50] sm:$0xff] }
 0x169   :  { %v1577_v58 = vpop.eup %1576 }
 0x16a   :  { %1582 = vtanh.f32 %v627_v56  ;;  %v626_v60 = vmul.f32 %v1577_v58, %v599_v57  ;;  %v1579_v62 = vpop.eup %1578  ;;  %v667_v56 = vld [vmem:[#allocation11 + $0x70] sm:$0xff]  ;;  %v664_v57 = vld [vmem:[#allocation11 + $0x58] sm:$0xff] }
 0x16b   :  { %v1581_v63 = vpop.eup %1580  ;;  %v631_v0 = vsub.f32 1.0, %v1579_v62  ;;  %v635_v2 = vmul.f32 %v1579_v62, %v1813_v36  ;;  %v1433_v36 = vcombine.high %v703_v21, %v707_v22  ;;  %v668_v58 = vld [vmem:[#allocation11 + $0x78] sm:$0xff] }
 0x16c   :  { %v628_v61 = vadd.f32 %v626_v60, %v597_v59  ;;  %v632_v6 = vsub.f32 1.0, %v1581_v63  ;;  %v636_v14 = vmul.f32 %v1581_v63, %v1815_v37  ;;  %v1432_v37 = vcombine.low %v703_v21, %v707_v22  ;;  %v655_v63 = vld [vmem:[#allocation11 + $0x10] sm:$0xff] }
 0x16d   :  { %v1400_v59 = vcombine.low %v671_v47, %v675_v48  ;;  %v1402_v60 = vcombine.low %v672_v49, %v676_v50  ;;  %v1395_v62 = vcombine.high %v664_v57, %v668_v58 }
 0x16e   :  { %1584 = vtanh.f32 %v628_v61  ;;  %v1393_v61 = vcombine.high %v663_v55, %v667_v56 }
 0x177   :  { %v1583_v1 = vpop.eup %1582 }
 0x178   :  { %v633_v3 = vmul.f32 %v1583_v1, %v631_v0  ;;  %v659_v0 = vld [vmem:[#allocation11 + $0x30] sm:$0xff]  ;;  %v656_v1 = vld [vmem:[#allocation11 + $0x18] sm:$0xff] }
 0x17a   :  { %v637_v7 = vadd.f32 %v635_v2, %v633_v3  ;;  %v660_v2 = vld [vmem:[#allocation11 + $0x38] sm:$0xff]  ;;  %v1392_v3 = vcombine.low %v663_v55, %v667_v56 }
 0x17b   :  { %v1585_v12 = vpop.eup %1584 }
 0x17c   :  { %639 = vst [vmem:[#allocation13] sm:$0xff] %v637_v7  ;;  %v634_v15 = vmul.f32 %v1585_v12, %v632_v6  ;;  %v1394_v6 = vcombine.low %v664_v57, %v668_v58  ;;  %v1387_v12 = vcombine.high %v656_v1, %v660_v2 }
 0x17e   :  { %v638_v18 = vadd.f32 %v636_v14, %v634_v15  ;;  %v1384_v14 = vcombine.low %v655_v63, %v659_v0  ;;  %v1386_v15 = vcombine.low %v656_v1, %v660_v2 }
 0x180   :  { %v1449_v19 = vpack.c.bf16 %v638_v18, %v637_v7  ;;  %640 = vst [vmem:[#allocation13 + $0x8] sm:$0xff] %v638_v18  ;;  %v1385_v7 = vcombine.high %v655_v63, %v659_v0 }
 0x182   :  { %1450 = vst [vmem:[#allocation2] sm:$0xff] %v1449_v19  }
 0x189   :  { %v1853_v26 = vld [vmem:[#allocation2] sm:$0xff]  }
 0x18a   :  { %1118 = vmatmul.mubr.bf16.vlgmr.msra.gmra.mxu0 %v1853_v26  ;;  %1161 = vmatmul.mubr.bf16.vlgmr.msra.gmra.mxu1 %v1853_v26 }
 0x18b   :  { %1172 = vmatpush1.bf16.msra.mxu0 %v1440_v9  ;;  %1215 = vmatpush1.bf16.msra.mxu1 %v1442_v13  ;;  %v1417_v9 = vcombine.high %v687_v34, %v691_v35  ;;  %v683_v13 = vld [vmem:[#allocation11 + $0xf0] sm:$0xff] }
 0x18c   :  { %1173 = vmatprep.subr.bf16.mxu0 %v1433_v36  ;;  %1216 = vmatprep.subr.bf16.mxu1 %v1435_v27  ;;  %v1409_v46 = vcombine.high %v679_v11, %v683_v13  ;;  %v1408_v51 = vcombine.low %v679_v11, %v683_v13 }
 0x18d   :  { %1203 = vmatprep.mubr.bf16.mxu0 %v1749_v8  ;;  %1246 = vmatprep.mubr.bf16.mxu1 %v1749_v8  ;;  %v1411_v8 = vcombine.high %v680_v40, %v684_v42 }
 0x18f   :  { %1174 = vmatpush1.bf16.msra.mxu0 %v1432_v37  ;;  %1217 = vmatpush1.bf16.msra.mxu1 %v1434_v31 }
 0x190   :  { %1175 = vmatprep.subr.bf16.mxu0 %v1425_v32  ;;  %1218 = vmatprep.subr.bf16.mxu1 %v1427_v33 }
 0x193   :  { %1176 = vmatpush1.bf16.msra.mxu0 %v1424_v4  ;;  %1219 = vmatpush1.bf16.msra.mxu1 %v1426_v5 }
 0x194   :  { %1177 = vmatprep.subr.bf16.mxu0 %v1417_v9  ;;  %1220 = vmatprep.subr.bf16.mxu1 %v1419_v10 }
 0x197   :  { %1178 = vmatpush1.bf16.msra.mxu0 %v1416_v44  ;;  %1221 = vmatpush1.bf16.msra.mxu1 %v1418_v45 }
 0x198   :  { %1179 = vmatprep.subr.bf16.mxu0 %v1409_v46  ;;  %1222 = vmatprep.subr.bf16.mxu1 %v1411_v8 }
 0x19b   :  { %1180 = vmatpush1.bf16.msra.mxu0 %v1408_v51  ;;  %1223 = vmatpush1.bf16.msra.mxu1 %v1410_v52 }
 0x19c   :  { %1181 = vmatprep.subr.bf16.mxu0 %v1401_v53  ;;  %1224 = vmatprep.subr.bf16.mxu1 %v1403_v54 }
 0x19f   :  { %1182 = vmatpush1.bf16.msra.mxu0 %v1400_v59  ;;  %1225 = vmatpush1.bf16.msra.mxu1 %v1402_v60 }
 0x1a0   :  { %1183 = vmatprep.subr.bf16.mxu0 %v1393_v61  ;;  %1226 = vmatprep.subr.bf16.mxu1 %v1395_v62 }
 0x1a3   :  { %1184 = vmatpush1.bf16.msra.mxu0 %v1392_v3  ;;  %1227 = vmatpush1.bf16.msra.mxu1 %v1394_v6 }
 0x1a4   :  { %1185 = vmatprep.subr.bf16.mxu0 %v1385_v7  ;;  %1228 = vmatprep.subr.bf16.mxu1 %v1387_v12 }
 0x1a7   :  { %1186 = vmatpush1.bf16.msra.mxu0 %v1384_v14  ;;  %1229 = vmatpush1.bf16.msra.mxu1 %v1386_v15 }
 0x1aa   :  { %1204 = vmatmul.mubr.bf16.vlgmr.msra.gmra.mxu0 %v1853_v26  ;;  %1247 = vmatmul.mubr.bf16.vlgmr.msra.gmra.mxu1 %v1853_v26 }
 0x1ab   :  { %1697 = shalt.err (!%p1694_p1)
}
 0x1ac   :  { %1296 = dma.vmem_to_hbm [thread:$0]  %s1291_s4, 256, %s1899_s7, [#allocation14], %s1737_s27, %s1737_s27, %s1738_s28   ;;  %v737_v34 = vsub.s32 4, %v1837_v16  ;;  %v745_v35 = vsub.s32 6, %v1837_v16  ;;  %v741_v38 = vsub.s32 5, %v1837_v16  ;;  %v749_v39 = vsub.s32 7, %v1837_v16 }
 0x1ad   :  { %v717_v18 = vld [vmem:[%s1897_s5] sm:$0xff]  ;;  %s1751_s5 = smov [#allocation12]  }
 0x1ae   :  { %v722_v19 = vrot.slane %v717_v18, %v177_v17  ;;  %v730_v21 = vrot.slane %v717_v18, %v185_v43  ;;  %v726_v22 = vrot.slane %v717_v18, %v181_v20  ;;  %v734_v23 = vrot.slane %v717_v18, %v189_v41  ;;  %s1278_s7 = sshll.u32 %s1751_s5, 4  ;;  %s1279_s7 = int_to_ptr.vmem [resolvable:$true] %s1278_s7 }
 0x1af   :  { %v738_v4 = vrot.slane %v717_v18, %v737_v34  ;;  %v746_v5 = vrot.slane %v717_v18, %v745_v35  ;;  %v742_v9 = vrot.slane %v717_v18, %v741_v38  ;;  %v750_v10 = vrot.slane %v717_v18, %v749_v39  ;;  %s1706_s27 = scalar_lea.vmem %s1279_s7, 2048  ;;  %p1711_p3 = scmp.lt.s32.totalorder %s1279_s7, %s1279_s7 }
 0x1b0   :  { %p1707_p2 = scmp.ne.s32.totalorder %s1279_s7, %s1706_s27  ;;  %p1712_p4 = scmp.lt.s32.totalorder %s1706_s27, %s1706_s27 }
 0x1b2   :  { %p1713_p5 = por %p1712_p4, %p1711_p3 }
 0x1b4   :  { %p1714_p6 = pnand %p1713_p5, %p1707_p2 }
 0x24a   :  { %v1119_v24 = vpop.f32.mrf.mxu0  ;;  %v1162_v25 = vpop.f32.mrf.mxu1 }
 0x24b   :  { %v1120_v26 = vadd.f32 %v1119_v24, %v722_v19  ;;  %v1163_v36 = vadd.f32 %v1162_v25, %v730_v21 }
 0x24c   :  { %v1121_v27 = vpop.f32.mrf.mxu0  ;;  %v1164_v28 = vpop.f32.mrf.mxu1 }
 0x24d   :  { %1257 = vst [vmem:[#allocation12] sm:$0xff] %v1120_v26  ;;  %1259 = vst [vmem:[#allocation12 + $0x10] sm:$0xff] %v1163_v36  ;;  %v1122_v29 = vadd.f32 %v1121_v27, %v726_v22  ;;  %v1165_v30 = vadd.f32 %v1164_v28, %v734_v23 }
 0x24e   :  { %v1123_v17 = vpop.f32.mrf.mxu0  ;;  %v1166_v37 = vpop.f32.mrf.mxu1 }
 0x24f   :  { %1258 = vst [vmem:[#allocation12 + $0x8] sm:$0xff] %v1122_v29  ;;  %1260 = vst [vmem:[#allocation12 + $0x18] sm:$0xff] %v1165_v30  ;;  %v1124_v43 = vadd.f32 %v1123_v17, %v722_v19  ;;  %v1167_v31 = vadd.f32 %v1166_v37, %v730_v21 }
 0x250   :  { %v1125_v20 = vpop.f32.mrf.mxu0  ;;  %v1168_v32 = vpop.f32.mrf.mxu1 }
 0x251   :  { %1265 = vst [vmem:[#allocation12 + $0x40] sm:$0xff] %v1124_v43  ;;  %1267 = vst [vmem:[#allocation12 + $0x50] sm:$0xff] %v1167_v31  ;;  %v1126_v41 = vadd.f32 %v1125_v20, %v726_v22  ;;  %v1169_v33 = vadd.f32 %v1168_v32, %v734_v23 }
 0x253   :  { %1266 = vst [vmem:[#allocation12 + $0x48] sm:$0xff] %v1126_v41  ;;  %1268 = vst [vmem:[#allocation12 + $0x58] sm:$0xff] %v1169_v33 }
 0x26a   :  { %v1205_v11 = vpop.f32.mrf.mxu0  ;;  %v1248_v13 = vpop.f32.mrf.mxu1 }
 0x26b   :  { %v1206_v40 = vadd.f32 %v1205_v11, %v738_v4  ;;  %v1249_v42 = vadd.f32 %v1248_v13, %v746_v5 }
 0x26c   :  { %v1207_v44 = vpop.f32.mrf.mxu0  ;;  %v1250_v45 = vpop.f32.mrf.mxu1 }
 0x26d   :  { %1261 = vst [vmem:[#allocation12 + $0x20] sm:$0xff] %v1206_v40  ;;  %1263 = vst [vmem:[#allocation12 + $0x30] sm:$0xff] %v1249_v42  ;;  %v1208_v46 = vadd.f32 %v1207_v44, %v742_v9  ;;  %v1251_v8 = vadd.f32 %v1250_v45, %v750_v10 }
 0x26e   :  { %v1209_v47 = vpop.f32.mrf.mxu0  ;;  %v1252_v48 = vpop.f32.mrf.mxu1 }
 0x26f   :  { %1262 = vst [vmem:[#allocation12 + $0x28] sm:$0xff] %v1208_v46  ;;  %1264 = vst [vmem:[#allocation12 + $0x38] sm:$0xff] %v1251_v8  ;;  %v1210_v16 = vadd.f32 %v1209_v47, %v738_v4  ;;  %v1253_v49 = vadd.f32 %v1252_v48, %v746_v5 }
 0x270   :  { %v1211_v50 = vpop.f32.mrf.mxu0  ;;  %v1254_v51 = vpop.f32.mrf.mxu1 }
 0x271   :  { %1269 = vst [vmem:[#allocation12 + $0x60] sm:$0xff] %v1210_v16  ;;  %1271 = vst [vmem:[#allocation12 + $0x70] sm:$0xff] %v1253_v49  ;;  %v1212_v52 = vadd.f32 %v1211_v50, %v742_v9  ;;  %v1255_v53 = vadd.f32 %v1254_v51, %v750_v10 }
 0x273   :  { %1270 = vst [vmem:[#allocation12 + $0x68] sm:$0xff] %v1212_v52  ;;  %1272 = vst [vmem:[#allocation12 + $0x78] sm:$0xff] %v1255_v53 }
 0x274   :  { %1717 = shalt.err (!%p1714_p6)
}
 0x275   :  { %s1752_s28 = smov 1024  }
 0x276   :  { %1284 = dma.vmem_to_hbm [thread:$0]  %s1279_s7, 2048, %s1898_s6, [#allocation5], %s1752_s28, %s1752_s28, %s1741_s1  }
 0x277   :  { %1732 = dma.done.wait [#allocation5], 2048  }
 0x278   :  { %1733 = vsyncadd [#allocation5], 4294965248 }
 0x279   :  { %1734 = dma.done.wait [#allocation14], 256  }
 0x27a   :  { %1735 = vsyncadd [#allocation14], 4294967040 }
 0x27b   :  { %1303 = vsyncpa [#allocation4], 1 }
 0x27c   :  { %1304 = vsyncpa [#allocation7], 1 }
 0x27d   :  { %1305 = vsyncpa [#allocation10], 1 }
 0x27e   :  { %1306 = vsyncpa [#allocation5], 1 }
 0x27f   :  { %1307 = vsyncpa [#allocation14], 1 }

</bundles_post_ra>
